<compile_context>
chip_gen: v5e
topology: v5e:2x2
jax: 0.10.0
libtpu: 0.0.40
codegen_flags: <defaults>
</compile_context>

<pallas_src>
import functools

import jax
import jax.numpy as jnp
from jax.experimental import pallas as pl
from jax.experimental.pallas import tpu as pltpu


def _round_up(n, m):
    return (n + m - 1) // m * m


def _stack_kernel(x_ref, w1_ref, w2_ref, out_ref, *, dilations, seq_len,
                  pad_right_only):
    """Fused ResidualStack forward on one (tile_rows, C) activation tile.

    x_ref:   (tile_rows, C)            input dtype, channels-last rows.
    w1_ref:  (n_layers, 3, C, Hp) bf16  k=3 dilated conv weights (tap-major).
    w2_ref:  (n_layers, Hp, C)    bf16  1x1 conv weights.
    out_ref: (tile_rows, C)            caller dtype.

    Tiles always contain whole sequences, so the roll+mask halo never crosses
    a tile boundary for rows whose mask is nonzero.
    """
    rows = x_ref.shape[0]
    L = seq_len

    # Per-row position inside its sequence (tiles start on sequence boundaries).
    pos = jax.lax.broadcasted_iota(jnp.int32, (rows, 1), 0) % L

    x = x_ref[...].astype(jnp.float32)                    # residual carried in f32

    for i, d in enumerate(dilations):                     # static unroll over layers
        h = jnp.maximum(x, 0.0)                           # ReLU before dilated conv
        offsets = (0, d, 2 * d) if pad_right_only else (-d, 0, d)
        a = None
        for k, o in enumerate(offsets):
            if o == 0:
                tap = h
            else:
                # tap[r] = h[r + o] within the same sequence, else 0 (conv zero pad).
                # Roll is a cheap XLU sublane rotation; out-of-sequence rows are
                # killed by the mask, reproducing the zero padding.
                rolled = pltpu.roll(h, shift=(-o) % rows, axis=0)
                mask = ((pos + o >= 0) & (pos + o < L)).astype(jnp.float32)
                tap = rolled * mask                       # (rows,1) mask broadcasts over lanes
            p = jnp.dot(tap.astype(jnp.bfloat16), w1_ref[i, k, :, :],
                        preferred_element_type=jnp.float32)
            a = p if a is None else a + p                 # accumulate three K=C dots
        a = jnp.maximum(a, 0.0).astype(jnp.bfloat16)      # ReLU before 1x1 conv
        y = jnp.dot(a, w2_ref[i, :, :], preferred_element_type=jnp.float32)
        x = x + y                                         # residual add

    out_ref[...] = jnp.maximum(x, 0.0).astype(out_ref.dtype)   # stack-final F.relu


def pack_params(params):
    """One-time weight packing (hoisted out of the forward path).

    params[i] = (w1: (3, C, H) f32, w2: (H, C) f32)
    Returns (w1_all: (n_layers, 3, C, Hp) bf16, w2_all: (n_layers, Hp, C) bf16)
    with H zero-padded to a lane-dense Hp.
    """
    n_layers = len(params)
    _, C, H = params[0][0].shape
    Hp = _round_up(H, 128)
    w1_all = jnp.zeros((n_layers, 3, C, Hp), jnp.float32)
    w2_all = jnp.zeros((n_layers, Hp, C), jnp.float32)
    for i, (w1, w2) in enumerate(params):
        w1_all = w1_all.at[i, :, :, :H].set(w1)
        w2_all = w2_all.at[i, :H, :].set(w2)
    return w1_all.astype(jnp.bfloat16), w2_all.astype(jnp.bfloat16)


def residual_stack_forward(x_ncl, w1_all, w2_all, *, init_dilation,
                           dilation_base, pad_right_only=False,
                           max_rows_per_tile=1024):
    """x_ncl: (B, C, L) like PyTorch Conv1d input. Returns (B, C, L)."""
    B, C, L = x_ncl.shape
    n_layers, _, Cw, Hp = w1_all.shape
    assert Cw == C, "packed weights do not match input channels"
    assert w2_all.shape == (n_layers, Hp, C), "residual add requires C_out == C_in"
    dilations = tuple(init_dilation * dilation_base ** i for i in range(n_layers))

    # NCL -> channels-last, batch folded into rows: (B*L, C).
    # TODO(synk): if the surrounding model keeps activations channels-last this
    # relayout pass (and the inverse below) disappears.
    x = jnp.transpose(x_ncl, (0, 2, 1)).reshape(B * L, C)

    # Pick a row tile made of whole sequences (keeps the halo inside the tile)
    # whose second-to-last block dim is a multiple of 8.
    max_seqs = max(1, min(B, max_rows_per_tile // max(L, 1)))
    seqs_per_tile = None
    for s in range(max_seqs, 0, -1):
        if B % s == 0 and (s * L) % 8 == 0:
            seqs_per_tile = s
            break
    if seqs_per_tile is None:
        seqs_per_tile = B          # whole-slab fallback (full-dim block is always legal)
    tile_rows = seqs_per_tile * L
    grid = (B // seqs_per_tile,)

    kernel = functools.partial(_stack_kernel, dilations=dilations, seq_len=L,
                               pad_right_only=pad_right_only)

    itemsize = x_ncl.dtype.itemsize
    w_bytes = (w1_all.size + w2_all.size) * 2                       # bf16
    io_bytes = 2 * B * L * C * itemsize
    flops = 2 * B * L * n_layers * (3 * C * Hp + Hp * C)
    # Rough per-tile VMEM: double-buffered in/out tiles + resident weights +
    # in-kernel f32 temporaries (x, h, tap, a, y).
    vmem_est = (4 * tile_rows * C * 4 + w_bytes
                + tile_rows * (6 * C + 3 * Hp) * 4)
    vmem_limit = int(min(max(2 * vmem_est, 32 * 1024 * 1024), 64 * 1024 * 1024))

    out = pl.pallas_call(
        kernel,
        out_shape=jax.ShapeDtypeStruct((B * L, C), x_ncl.dtype),
        grid=grid,
        in_specs=[
            pl.BlockSpec((tile_rows, C), lambda i: (i, 0)),
            pl.BlockSpec((n_layers, 3, C, Hp), lambda i: (0, 0, 0, 0)),
            pl.BlockSpec((n_layers, Hp, C), lambda i: (0, 0, 0)),
        ],
        out_specs=pl.BlockSpec((tile_rows, C), lambda i: (i, 0)),
        compiler_params=pltpu.CompilerParams(
            dimension_semantics=("parallel",),
            vmem_limit_bytes=vmem_limit),
        cost_estimate=pl.CostEstimate(flops=flops, transcendentals=0,
                                      bytes_accessed=io_bytes + w_bytes),
    )(x, w1_all, w2_all)

    return jnp.transpose(out.reshape(B, L, C), (0, 2, 1))           # back to NCL


def residual_stack_reference(x_ncl, params, *, init_dilation, dilation_base,
                             pad_right_only=False):
    """Pure-JAX f32 reference implementing the same assumed Residual block."""
    x = x_ncl.astype(jnp.float32)
    L = x.shape[2]
    for i, (w1, w2) in enumerate(params):
        d = init_dilation * dilation_base ** i
        h = jax.nn.relu(x)
        pads = (0, 2 * d) if pad_right_only else (d, d)
        hp = jnp.pad(h, ((0, 0), (0, 0), pads))
        a = sum(jnp.einsum("bct,ch->bht", hp[:, :, k * d:k * d + L], w1[k])
                for k in range(3))
        a = jax.nn.relu(a)
        x = x + jnp.einsum("bht,hc->bct", a, w2)
    return jax.nn.relu(x)


def init_params(key, in_channels, num_hiddens, num_residual_layers,
                num_residual_hiddens):
    """Deterministic synthetic weights.

    conv1 PyTorch shape (H, C_in, 3) -> stored as (3, C_in, H)
    conv2 PyTorch shape (C_out, H, 1) -> stored as (H, C_out)
    """
    params = []
    for _ in range(num_residual_layers):
        k1, k2, key = jax.random.split(key, 3)
        w1 = jax.random.normal(
            k1, (3, in_channels, num_residual_hiddens), jnp.float32) * 0.1
        w2 = jax.random.normal(
            k2, (num_residual_hiddens, num_hiddens), jnp.float32) * 0.1
        params.append((w1, w2))
    return params


if __name__ == "__main__":
    batch = 4
    in_channels = 32          # == num_hiddens (residual add requires it)
    num_hiddens = 32
    num_residual_layers = 2
    num_residual_hiddens = 16
    seq_len = 16
    init_dilation = 1
    dilation_base = 2

    key = jax.random.PRNGKey(0)
    kx, kp = jax.random.split(key)
    x = jax.random.normal(kx, (batch, in_channels, seq_len), jnp.float32)  # NCL
    params = init_params(kp, in_channels, num_hiddens,
                         num_residual_layers, num_residual_hiddens)

    # One-time weight packing, hoisted out of the forward path.
    w1_all, w2_all = pack_params(params)

    for pad_right_only in (False, True):
        ref = residual_stack_reference(
            x, params,
            init_dilation=init_dilation, dilation_base=dilation_base,
            pad_right_only=pad_right_only)
        # max_rows_per_tile=1024 -> single tile; =seq_len -> one sequence per
        # tile (exercises the multi-tile "parallel" grid path).
        for max_rows in (1024, seq_len):
            out = residual_stack_forward(
                x, w1_all, w2_all,
                init_dilation=init_dilation, dilation_base=dilation_base,
                pad_right_only=pad_right_only, max_rows_per_tile=max_rows)
            out = jax.block_until_ready(out)
            assert out.shape == (batch, num_hiddens, seq_len), out.shape
            assert bool(jnp.all(out >= 0.0))  # final ReLU
            err = float(jnp.max(jnp.abs(out.astype(jnp.float32) - ref)))
            assert err < 5e-2, (
                f"max abs err {err} (pad_right_only={pad_right_only}, "
                f"max_rows_per_tile={max_rows})")

    print("KERNEL_OK")
</pallas_src>

<mosaic_0001>
module attributes {stable_mosaic.version = 11 : i64} {
  func.func @_stack_kernel(%arg0: i32, %arg1: memref<64x32xf32, #tpu.memory_space<vmem>>, %arg2: memref<2x3x32x128xbf16, #tpu.memory_space<vmem>>, %arg3: memref<2x128x32xbf16, #tpu.memory_space<vmem>>, %arg4: memref<64x32xf32, #tpu.memory_space<vmem>>) attributes {dimension_semantics = [#tpu.dimension_semantics<parallel>], iteration_bounds = array<i64: 1>, scalar_prefetch = 0 : i64, scratch_operands = 0 : i64, tpu.core_type = #tpu.core_type<tc>, window_params = [{transform_indices = @transform_0, window_bounds = array<i64: 64, 32>}, {pipeline_mode = #tpu.pipeline_mode<synchronous>, transform_indices = @transform_1, window_bounds = array<i64: 2, 3, 32, 128>}, {pipeline_mode = #tpu.pipeline_mode<synchronous>, transform_indices = @transform_2, window_bounds = array<i64: 2, 128, 32>}, {transform_indices = @transform_3, window_bounds = array<i64: 64, 32>}]} {
    %0 = tpu.iota {dimensions = array<i32: 0>} : vector<64x1xi32>
    %c16_i32 = arith.constant 16 : i32
    %c0_i32 = arith.constant 0 : i32
    %1 = arith.cmpi eq, %c16_i32, %c0_i32 : i32
    %c1_i32 = arith.constant 1 : i32
    %2 = arith.select %1, %c1_i32, %c16_i32 : i32
    %3 = vector.broadcast %2 : i32 to vector<64x1xi32>
    %4 = arith.remsi %0, %3 : vector<64x1xi32>
    %c0_i32_0 = arith.constant 0 : i32
    %5 = vector.broadcast %c0_i32_0 : i32 to vector<64x1xi32>
    %6 = arith.cmpi ne, %4, %5 : vector<64x1xi32>
    %c0_i32_1 = arith.constant 0 : i32
    %7 = vector.broadcast %c0_i32_1 : i32 to vector<64x1xi32>
    %8 = arith.cmpi slt, %4, %7 : vector<64x1xi32>
    %c0_i32_2 = arith.constant 0 : i32
    %9 = arith.cmpi slt, %2, %c0_i32_2 : i32
    %10 = vector.broadcast %9 : i1 to vector<64x1xi1>
    %11 = vector.broadcast %10 : vector<64x1xi1> to vector<64x1xi1>
    %12 = arith.xori %8, %11 : vector<64x1xi1>
    %13 = arith.andi %12, %6 : vector<64x1xi1>
    %14 = vector.broadcast %2 : i32 to vector<64x1xi32>
    %15 = arith.addi %4, %14 : vector<64x1xi32>
    %16 = arith.select %13, %15, %4 : vector<64x1xi1>, vector<64x1xi32>
    %c0 = arith.constant 0 : index
    %c0_3 = arith.constant 0 : index
    %17 = vector.load %arg1[%c0, %c0_3] : memref<64x32xf32, #tpu.memory_space<vmem>>, vector<64x32xf32>
    %cst = arith.constant 0.000000e+00 : f32
    %18 = vector.broadcast %cst : f32 to vector<64x32xf32>
    %19 = arith.maximumf %17, %18 : vector<64x32xf32>
    %c1_i32_4 = arith.constant 1 : i32
    %20 = tpu.dynamic_rotate %19 by %c1_i32_4 dim 0 : vector<64x32xf32>, i32 -> vector<64x32xf32>
    %c-1_i32 = arith.constant -1 : i32
    %21 = vector.broadcast %c-1_i32 : i32 to vector<64x1xi32>
    %22 = arith.addi %16, %21 : vector<64x1xi32>
    %c0_i32_5 = arith.constant 0 : i32
    %23 = vector.broadcast %c0_i32_5 : i32 to vector<64x1xi32>
    %24 = arith.cmpi sge, %22, %23 : vector<64x1xi32>
    %c-1_i32_6 = arith.constant -1 : i32
    %25 = vector.broadcast %c-1_i32_6 : i32 to vector<64x1xi32>
    %26 = arith.addi %16, %25 : vector<64x1xi32>
    %c16_i32_7 = arith.constant 16 : i32
    %27 = vector.broadcast %c16_i32_7 : i32 to vector<64x1xi32>
    %28 = arith.cmpi slt, %26, %27 : vector<64x1xi32>
    %29 = arith.andi %24, %28 : vector<64x1xi1>
    %30 = arith.extui %29 : vector<64x1xi1> to vector<64x1xi32>
    %31 = arith.sitofp %30 : vector<64x1xi32> to vector<64x1xf32>
    %32 = vector.broadcast %31 : vector<64x1xf32> to vector<64x32xf32>
    %33 = arith.mulf %20, %32 : vector<64x32xf32>
    %34 = arith.truncf %33 : vector<64x32xf32> to vector<64x32xbf16>
    %c0_8 = arith.constant 0 : index
    %c0_9 = arith.constant 0 : index
    %c0_10 = arith.constant 0 : index
    %c0_11 = arith.constant 0 : index
    %35 = vector.load %arg2[%c0_8, %c0_9, %c0_10, %c0_11] : memref<2x3x32x128xbf16, #tpu.memory_space<vmem>>, vector<1x1x32x128xbf16>
    %36 = vector.shape_cast %35 : vector<1x1x32x128xbf16> to vector<32x128xbf16>
    %cst_12 = arith.constant dense<0.000000e+00> : vector<64x128xf32>
    %37 = tpu.matmul %34, %36, %cst_12 {dimension_numbers = #tpu.dot_dimension_numbers<[1], [0], [0], [1], [0, 0, 1, 1], [], []>} : vector<64x32xbf16>, vector<32x128xbf16>, vector<64x128xf32> -> vector<64x128xf32>
    %38 = arith.truncf %19 : vector<64x32xf32> to vector<64x32xbf16>
    %c0_13 = arith.constant 0 : index
    %c1 = arith.constant 1 : index
    %c0_14 = arith.constant 0 : index
    %c0_15 = arith.constant 0 : index
    %39 = vector.load %arg2[%c0_13, %c1, %c0_14, %c0_15] : memref<2x3x32x128xbf16, #tpu.memory_space<vmem>>, vector<1x1x32x128xbf16>
    %40 = vector.shape_cast %39 : vector<1x1x32x128xbf16> to vector<32x128xbf16>
    %cst_16 = arith.constant dense<0.000000e+00> : vector<64x128xf32>
    %41 = tpu.matmul %38, %40, %cst_16 {dimension_numbers = #tpu.dot_dimension_numbers<[1], [0], [0], [1], [0, 0, 1, 1], [], []>} : vector<64x32xbf16>, vector<32x128xbf16>, vector<64x128xf32> -> vector<64x128xf32>
    %42 = arith.addf %37, %41 : vector<64x128xf32>
    %c63_i32 = arith.constant 63 : i32
    %43 = tpu.dynamic_rotate %19 by %c63_i32 dim 0 : vector<64x32xf32>, i32 -> vector<64x32xf32>
    %c1_i32_17 = arith.constant 1 : i32
    %44 = vector.broadcast %c1_i32_17 : i32 to vector<64x1xi32>
    %45 = arith.addi %16, %44 : vector<64x1xi32>
    %c0_i32_18 = arith.constant 0 : i32
    %46 = vector.broadcast %c0_i32_18 : i32 to vector<64x1xi32>
    %47 = arith.cmpi sge, %45, %46 : vector<64x1xi32>
    %c1_i32_19 = arith.constant 1 : i32
    %48 = vector.broadcast %c1_i32_19 : i32 to vector<64x1xi32>
    %49 = arith.addi %16, %48 : vector<64x1xi32>
    %c16_i32_20 = arith.constant 16 : i32
    %50 = vector.broadcast %c16_i32_20 : i32 to vector<64x1xi32>
    %51 = arith.cmpi slt, %49, %50 : vector<64x1xi32>
    %52 = arith.andi %47, %51 : vector<64x1xi1>
    %53 = arith.extui %52 : vector<64x1xi1> to vector<64x1xi32>
    %54 = arith.sitofp %53 : vector<64x1xi32> to vector<64x1xf32>
    %55 = vector.broadcast %54 : vector<64x1xf32> to vector<64x32xf32>
    %56 = arith.mulf %43, %55 : vector<64x32xf32>
    %57 = arith.truncf %56 : vector<64x32xf32> to vector<64x32xbf16>
    %c0_21 = arith.constant 0 : index
    %c2 = arith.constant 2 : index
    %c0_22 = arith.constant 0 : index
    %c0_23 = arith.constant 0 : index
    %58 = vector.load %arg2[%c0_21, %c2, %c0_22, %c0_23] : memref<2x3x32x128xbf16, #tpu.memory_space<vmem>>, vector<1x1x32x128xbf16>
    %59 = vector.shape_cast %58 : vector<1x1x32x128xbf16> to vector<32x128xbf16>
    %cst_24 = arith.constant dense<0.000000e+00> : vector<64x128xf32>
    %60 = tpu.matmul %57, %59, %cst_24 {dimension_numbers = #tpu.dot_dimension_numbers<[1], [0], [0], [1], [0, 0, 1, 1], [], []>} : vector<64x32xbf16>, vector<32x128xbf16>, vector<64x128xf32> -> vector<64x128xf32>
    %61 = arith.addf %42, %60 : vector<64x128xf32>
    %cst_25 = arith.constant 0.000000e+00 : f32
    %62 = vector.broadcast %cst_25 : f32 to vector<64x128xf32>
    %63 = arith.maximumf %61, %62 : vector<64x128xf32>
    %64 = arith.truncf %63 : vector<64x128xf32> to vector<64x128xbf16>
    %c0_26 = arith.constant 0 : index
    %c0_27 = arith.constant 0 : index
    %c0_28 = arith.constant 0 : index
    %65 = vector.load %arg3[%c0_26, %c0_27, %c0_28] : memref<2x128x32xbf16, #tpu.memory_space<vmem>>, vector<1x128x32xbf16>
    %66 = vector.shape_cast %65 : vector<1x128x32xbf16> to vector<128x32xbf16>
    %cst_29 = arith.constant dense<0.000000e+00> : vector<64x32xf32>
    %67 = tpu.matmul %64, %66, %cst_29 {dimension_numbers = #tpu.dot_dimension_numbers<[1], [0], [0], [1], [0, 0, 1, 1], [], []>} : vector<64x128xbf16>, vector<128x32xbf16>, vector<64x32xf32> -> vector<64x32xf32>
    %68 = arith.addf %17, %67 : vector<64x32xf32>
    %cst_30 = arith.constant 0.000000e+00 : f32
    %69 = vector.broadcast %cst_30 : f32 to vector<64x32xf32>
    %70 = arith.maximumf %68, %69 : vector<64x32xf32>
    %c2_i32 = arith.constant 2 : i32
    %71 = tpu.dynamic_rotate %70 by %c2_i32 dim 0 : vector<64x32xf32>, i32 -> vector<64x32xf32>
    %c-2_i32 = arith.constant -2 : i32
    %72 = vector.broadcast %c-2_i32 : i32 to vector<64x1xi32>
    %73 = arith.addi %16, %72 : vector<64x1xi32>
    %c0_i32_31 = arith.constant 0 : i32
    %74 = vector.broadcast %c0_i32_31 : i32 to vector<64x1xi32>
    %75 = arith.cmpi sge, %73, %74 : vector<64x1xi32>
    %c-2_i32_32 = arith.constant -2 : i32
    %76 = vector.broadcast %c-2_i32_32 : i32 to vector<64x1xi32>
    %77 = arith.addi %16, %76 : vector<64x1xi32>
    %c16_i32_33 = arith.constant 16 : i32
    %78 = vector.broadcast %c16_i32_33 : i32 to vector<64x1xi32>
    %79 = arith.cmpi slt, %77, %78 : vector<64x1xi32>
    %80 = arith.andi %75, %79 : vector<64x1xi1>
    %81 = arith.extui %80 : vector<64x1xi1> to vector<64x1xi32>
    %82 = arith.sitofp %81 : vector<64x1xi32> to vector<64x1xf32>
    %83 = vector.broadcast %82 : vector<64x1xf32> to vector<64x32xf32>
    %84 = arith.mulf %71, %83 : vector<64x32xf32>
    %85 = arith.truncf %84 : vector<64x32xf32> to vector<64x32xbf16>
    %c1_34 = arith.constant 1 : index
    %c0_35 = arith.constant 0 : index
    %c0_36 = arith.constant 0 : index
    %c0_37 = arith.constant 0 : index
    %86 = vector.load %arg2[%c1_34, %c0_35, %c0_36, %c0_37] : memref<2x3x32x128xbf16, #tpu.memory_space<vmem>>, vector<1x1x32x128xbf16>
    %87 = vector.shape_cast %86 : vector<1x1x32x128xbf16> to vector<32x128xbf16>
    %cst_38 = arith.constant dense<0.000000e+00> : vector<64x128xf32>
    %88 = tpu.matmul %85, %87, %cst_38 {dimension_numbers = #tpu.dot_dimension_numbers<[1], [0], [0], [1], [0, 0, 1, 1], [], []>} : vector<64x32xbf16>, vector<32x128xbf16>, vector<64x128xf32> -> vector<64x128xf32>
    %89 = arith.truncf %70 : vector<64x32xf32> to vector<64x32xbf16>
    %c1_39 = arith.constant 1 : index
    %c1_40 = arith.constant 1 : index
    %c0_41 = arith.constant 0 : index
    %c0_42 = arith.constant 0 : index
    %90 = vector.load %arg2[%c1_39, %c1_40, %c0_41, %c0_42] : memref<2x3x32x128xbf16, #tpu.memory_space<vmem>>, vector<1x1x32x128xbf16>
    %91 = vector.shape_cast %90 : vector<1x1x32x128xbf16> to vector<32x128xbf16>
    %cst_43 = arith.constant dense<0.000000e+00> : vector<64x128xf32>
    %92 = tpu.matmul %89, %91, %cst_43 {dimension_numbers = #tpu.dot_dimension_numbers<[1], [0], [0], [1], [0, 0, 1, 1], [], []>} : vector<64x32xbf16>, vector<32x128xbf16>, vector<64x128xf32> -> vector<64x128xf32>
    %93 = arith.addf %88, %92 : vector<64x128xf32>
    %c62_i32 = arith.constant 62 : i32
    %94 = tpu.dynamic_rotate %70 by %c62_i32 dim 0 : vector<64x32xf32>, i32 -> vector<64x32xf32>
    %c2_i32_44 = arith.constant 2 : i32
    %95 = vector.broadcast %c2_i32_44 : i32 to vector<64x1xi32>
    %96 = arith.addi %16, %95 : vector<64x1xi32>
    %c0_i32_45 = arith.constant 0 : i32
    %97 = vector.broadcast %c0_i32_45 : i32 to vector<64x1xi32>
    %98 = arith.cmpi sge, %96, %97 : vector<64x1xi32>
    %c2_i32_46 = arith.constant 2 : i32
    %99 = vector.broadcast %c2_i32_46 : i32 to vector<64x1xi32>
    %100 = arith.addi %16, %99 : vector<64x1xi32>
    %c16_i32_47 = arith.constant 16 : i32
    %101 = vector.broadcast %c16_i32_47 : i32 to vector<64x1xi32>
    %102 = arith.cmpi slt, %100, %101 : vector<64x1xi32>
    %103 = arith.andi %98, %102 : vector<64x1xi1>
    %104 = arith.extui %103 : vector<64x1xi1> to vector<64x1xi32>
    %105 = arith.sitofp %104 : vector<64x1xi32> to vector<64x1xf32>
    %106 = vector.broadcast %105 : vector<64x1xf32> to vector<64x32xf32>
    %107 = arith.mulf %94, %106 : vector<64x32xf32>
    %108 = arith.truncf %107 : vector<64x32xf32> to vector<64x32xbf16>
    %c1_48 = arith.constant 1 : index
    %c2_49 = arith.constant 2 : index
    %c0_50 = arith.constant 0 : index
    %c0_51 = arith.constant 0 : index
    %109 = vector.load %arg2[%c1_48, %c2_49, %c0_50, %c0_51] : memref<2x3x32x128xbf16, #tpu.memory_space<vmem>>, vector<1x1x32x128xbf16>
    %110 = vector.shape_cast %109 : vector<1x1x32x128xbf16> to vector<32x128xbf16>
    %cst_52 = arith.constant dense<0.000000e+00> : vector<64x128xf32>
    %111 = tpu.matmul %108, %110, %cst_52 {dimension_numbers = #tpu.dot_dimension_numbers<[1], [0], [0], [1], [0, 0, 1, 1], [], []>} : vector<64x32xbf16>, vector<32x128xbf16>, vector<64x128xf32> -> vector<64x128xf32>
    %112 = arith.addf %93, %111 : vector<64x128xf32>
    %cst_53 = arith.constant 0.000000e+00 : f32
    %113 = vector.broadcast %cst_53 : f32 to vector<64x128xf32>
    %114 = arith.maximumf %112, %113 : vector<64x128xf32>
    %115 = arith.truncf %114 : vector<64x128xf32> to vector<64x128xbf16>
    %c1_54 = arith.constant 1 : index
    %c0_55 = arith.constant 0 : index
    %c0_56 = arith.constant 0 : index
    %116 = vector.load %arg3[%c1_54, %c0_55, %c0_56] : memref<2x128x32xbf16, #tpu.memory_space<vmem>>, vector<1x128x32xbf16>
    %117 = vector.shape_cast %116 : vector<1x128x32xbf16> to vector<128x32xbf16>
    %cst_57 = arith.constant dense<0.000000e+00> : vector<64x32xf32>
    %118 = tpu.matmul %115, %117, %cst_57 {dimension_numbers = #tpu.dot_dimension_numbers<[1], [0], [0], [1], [0, 0, 1, 1], [], []>} : vector<64x128xbf16>, vector<128x32xbf16>, vector<64x32xf32> -> vector<64x32xf32>
    %119 = arith.addf %68, %118 : vector<64x32xf32>
    %cst_58 = arith.constant 0.000000e+00 : f32
    %120 = vector.broadcast %cst_58 : f32 to vector<64x32xf32>
    %121 = arith.maximumf %119, %120 : vector<64x32xf32>
    %c0_59 = arith.constant 0 : index
    %c0_60 = arith.constant 0 : index
    %122 = vector.load %arg4[%c0_59, %c0_60] : memref<64x32xf32, #tpu.memory_space<vmem>>, vector<64x32xf32>
    tpu.vector_store %arg4[%c0_59, %c0_60], %121 {strides = array<i32>} : memref<64x32xf32, #tpu.memory_space<vmem>>, vector<64x32xf32>,
    return
  }
  func.func @transform_0(%arg0: i32) -> (i32, i32) {
    %c0_i32 = arith.constant 0 : i32
    %c0_i32_0 = arith.constant 0 : i32
    return %arg0, %c0_i32 : i32, i32
  }
  func.func @transform_1(%arg0: i32) -> (i32, i32, i32, i32) {
    %c0_i32 = arith.constant 0 : i32
    %c0_i32_0 = arith.constant 0 : i32
    %c0_i32_1 = arith.constant 0 : i32
    %c0_i32_2 = arith.constant 0 : i32
    %c0_i32_3 = arith.constant 0 : i32
    return %c0_i32, %c0_i32_0, %c0_i32_1, %c0_i32_2 : i32, i32, i32, i32
  }
  func.func @transform_2(%arg0: i32) -> (i32, i32, i32) {
    %c0_i32 = arith.constant 0 : i32
    %c0_i32_0 = arith.constant 0 : i32
    %c0_i32_1 = arith.constant 0 : i32
    %c0_i32_2 = arith.constant 0 : i32
    return %c0_i32, %c0_i32_0, %c0_i32_1 : i32, i32, i32
  }
  func.func @transform_3(%arg0: i32) -> (i32, i32) {
    %c0_i32 = arith.constant 0 : i32
    %c0_i32_0 = arith.constant 0 : i32
    return %arg0, %c0_i32 : i32, i32
  }
}

</mosaic_0001>

<bundles_post_ra>
// kernel: tpu_custom_call.1
= control target key start
LH: loop header
LB: loop body
LE: loop exit
PB: predicated region body
PF: predicated region fallthrough
CT: control target
= control target key end

     0   :  { %v15_v0 = vlaneseq  ;;  %vm238_vm0 = vcmask 261120   ;;  %v1296_v29 = vmov 0.0   ;;  %s1740_s1 = inlined_call_operand.vmem [shape: bf16[2,3,32,128], index: 1, kind: input, shape index: {}]   ;;  %s1741_s0 = inlined_call_operand.vmem [shape: f32[64,32], index: 0, kind: input, shape index: {}]   ;;  %s1742_s2 = inlined_call_operand.vmem [shape: bf16[2,128,32], index: 2, kind: input, shape index: {}]   ;;  %s1743_s3 = inlined_call_operand.vmem [shape: f32[64,32], index: 3, kind: output, shape index: {}]  }
   0x1   :  { %v1262_v1 = vld [vmem:[%s1740_s1 + $0x18] sm:$0xff]  ;;  %v1260_v2 = vld [vmem:[%s1740_s1 + $0x8] sm:$0xff]  ;;  %v1261_v3 = vld [vmem:[%s1740_s1 + $0x10] sm:$0xff] }
   0x2   :  { %v1264_v4 = vld [vmem:[%s1740_s1 + $0x28] sm:$0xff]  ;;  %v1332_v5 = vld [vmem:[%s1741_s0] sm:$0xff]  ;;  %v1334_v6 = vshrl.u32 %v15_v0, 7  ;;  %257 = vmatpush.bf16.msra.mxu0 %v1262_v1  ;;  %310 = vmatpush.bf16.msra.mxu1 %v1260_v2  ;;  %v1350_v10 = vld [vmem:[%s1741_s0 + $0x38] sm:$0xff] }
   0x3   :  { %v1259_v7 = vld [vmem:[%s1740_s1] sm:$0xff]  ;;  %v1342_v8 = vld [vmem:[%s1741_s0 + $0x8] sm:$0xff]  ;;  %v1345_v9 = vmax.f32 %v1332_v5, 0.0  ;;  %445 = vmatpush.bf16.msra.mxu2 %v1264_v4  ;;  %v1358_v14 = vmax.f32 %v1350_v10, 0.0  ;;  %v1363_v15 = vld [vmem:[%s1741_s0 + $0x10] sm:$0xff] }
   0x4   :  { %v129_v11 = vmax.f32 %v1342_v8, 0.0  ;;  %v1263_v12 = vld [vmem:[%s1740_s1 + $0x20] sm:$0xff]  ;;  %v28_v13 = vand.u32 15, %v1334_v6  ;;  %vm144_vm1 = vcmp.lt.s32.totalorder %v1334_v6, 1  ;;  %v1368_v17 = vadd.s32 8, %v1334_v6  ;;  %v1396_v35 = vld [vmem:[%s1741_s0 + $0x18] sm:$0xff] }
   0x5   :  { %v136_v16 = vrot.slane %v1345_v9, 7  ;;  %v130_v18 = vmax.f32 %v1363_v15, 0.0  ;;  %v143_v21 = vrot.slane %v1358_v14, 7  ;;  %vm341_vm2 = vcmp.lt.s32.totalorder %v1334_v6, 7  ;;  %v1404_v37 = vld [vmem:[%s1741_s0 + $0x20] sm:$0xff]  ;;  %v1442_v2 = vld [vmem:[%s1741_s0 + $0x28] sm:$0xff] }
   0x6   :  { %v217_v19 = vpack.c.bf16 %v129_v11, %v1345_v9  ;;  %v137_v20 = vrot.slane %v129_v11, 7  ;;  %v153_v22 = vadd.s32 4294967295, %v28_v13  ;;  %258 = vmatpush.bf16.msra.mxu0 %v1261_v3  ;;  %311 = vmatpush.bf16.msra.mxu1 %v1259_v7  ;;  %v35_v23 = vand.u32 15, %v1368_v17  ;;  %v1448_v4 = vld [vmem:[%s1741_s0 + $0x30] sm:$0xff] }
   0x7   :  { %v334_v24 = vrot.slane %v129_v11, 1  ;;  %v335_v25 = vrot.slane %v130_v18, 1  ;;  %446 = vmatpush.bf16.msra.mxu2 %v1263_v12  ;;  %v152_v26 = vsel %vm144_vm1, %v143_v21, %v136_v16  ;;  %v333_v27 = vrot.slane %v1345_v9, 1  ;;  %v1270_v9 = vld [vmem:[%s1742_s2 + $0x28] sm:$0xff] }
   0x8   :  { %vm161_vm3 = vcmp.ge.s32.totalorder %v153_v22, 0  ;;  %v151_v28 = vsel %vm144_vm1, %v136_v16, %v137_v20  ;;  %v351_v31 = vadd.s32 1, %v35_v23  ;;  %v1391_v34 = vadd.s32 16, %v1334_v6 }
   0x9   :  { %v1071_v30 = vsel %vm161_vm3, 1.0, %v1296_v29  ;;  %1087 = vmatmul.msk.bf16.vlgmr.msra.gmra.mxu0 %vm238_vm0, %v217_v19  ;;  %v347_v33 = vsel %vm341_vm2, %v334_v24, %v335_v25  ;;  %v1399_v36 = vadd.s32 24, %v1334_v6  ;;  %v348_v39 = vsel %vm341_vm2, %v333_v27, %v334_v24 }
   0xa   :  { %v201_v32 = vmul.f32 %v1071_v30, %v152_v26  ;;  %vm367_vm4 = vcmp.lt.s32.totalorder %v351_v31, 16  ;;  %v42_v41 = vand.u32 15, %v1391_v34  ;;  %v131_v44 = vmax.f32 %v1396_v35, 0.0  ;;  %v1271_v30 = vld [vmem:[%s1742_s2 + $0x30] sm:$0xff] }
   0xb   :  { %v1103_v40 = vsel %vm367_vm4, 1.0, %v1296_v29  ;;  %v49_v43 = vand.u32 15, %v1399_v36  ;;  %v132_v46 = vmax.f32 %v1404_v37, 0.0  ;;  %v138_v48 = vrot.slane %v130_v18, 7 }
   0xc   :  { %v209_v38 = vpack.c.bf16 %v151_v28, %v201_v32  ;;  %v399_v42 = vmul.f32 %v1103_v40, %v347_v33  ;;  %v155_v45 = vadd.s32 4294967295, %v42_v41  ;;  %v336_v50 = vrot.slane %v131_v44, 1 }
   0xd   :  { %v353_v49 = vadd.s32 1, %v49_v43  ;;  %v337_v51 = vrot.slane %v132_v46, 1  ;;  %v139_v52 = vrot.slane %v131_v44, 7  ;;  %v150_v53 = vsel %vm144_vm1, %v137_v20, %v138_v48  ;;  %v1272_v20 = vld [vmem:[%s1742_s2 + $0x38] sm:$0xff] }
   0xe   :  { %1099 = vmatmul.msk.bf16.vlgmr.msra.gmra.mxu1 %vm238_vm0, %v209_v38  ;;  %v406_v47 = vpack.c.bf16 %v399_v42, %v348_v39  ;;  %vm163_vm5 = vcmp.ge.s32.totalorder %v155_v45, 0  ;;  %v1425_v55 = vadd.s32 32, %v1334_v6  ;;  %v218_v56 = vpack.c.bf16 %v131_v44, %v130_v18  ;;  %552 = vmatpush.bf16.msrb.mxu0 %v1272_v20 }
   0xf   :  { %v1072_v54 = vsel %vm163_vm5, 1.0, %v1296_v29  ;;  %vm369_vm6 = vcmp.lt.s32.totalorder %v353_v49, 16  ;;  %v345_v58 = vsel %vm341_vm2, %v336_v50, %v337_v51  ;;  %v149_v60 = vsel %vm144_vm1, %v138_v48, %v139_v52  ;;  %1287 = vmatpush.bf16.msra.mxu3 %v1272_v20 }
  0x10   :  { %1119 = vmatmul.msk.bf16.vlgmr.msra.gmra.mxu2 %vm238_vm0, %v406_v47  ;;  %v203_v57 = vmul.f32 %v1072_v54, %v150_v53  ;;  %v1104_v59 = vsel %vm369_vm6, 1.0, %v1296_v29  ;;  %v1433_v61 = vadd.s32 40, %v1334_v6  ;;  %v56_v62 = vand.u32 15, %v1425_v55 }
  0x11   :  { %v401_v63 = vmul.f32 %v1104_v59, %v345_v58  ;;  %v346_v1 = vsel %vm341_vm2, %v335_v25, %v336_v50  ;;  %v133_v12 = vmax.f32 %v1442_v2, 0.0  ;;  %v134_v16 = vmax.f32 %v1448_v4, 0.0 }
  0x12   :  { %v210_v0 = vpack.c.bf16 %v149_v60, %v203_v57  ;;  %v63_v3 = vand.u32 15, %v1433_v61  ;;  %v157_v7 = vadd.s32 4294967295, %v56_v62  ;;  %v140_v18 = vrot.slane %v132_v46, 7  ;;  %553 = vmatpush.bf16.msrb.mxu0 %v1271_v30 }
  0x13   :  { %v407_v11 = vpack.c.bf16 %v401_v63, %v346_v1  ;;  %v338_v22 = vrot.slane %v133_v12, 1  ;;  %v339_v24 = vrot.slane %v134_v16, 1  ;;  %v141_v25 = vrot.slane %v133_v12, 7  ;;  %1288 = vmatpush.bf16.msra.mxu3 %v1271_v30 }
  0x14   :  { %v355_v19 = vadd.s32 1, %v63_v3  ;;  %vm165_vm7 = vcmp.ge.s32.totalorder %v157_v7, 0  ;;  %v148_v26 = vsel %vm144_vm1, %v139_v52, %v140_v18  ;;  %v1468_v31 = vadd.s32 48, %v1334_v6 }
  0x15   :  { %v1073_v28 = vsel %vm165_vm7, 1.0, %v1296_v29  ;;  %v219_v32 = vpack.c.bf16 %v133_v12, %v132_v46  ;;  %v343_v38 = vsel %vm341_vm2, %v338_v22, %v339_v24  ;;  %v147_v40 = vsel %vm144_vm1, %v140_v18, %v141_v25  ;;  %v1266_v12 = vld [vmem:[%s1742_s2 + $0x8] sm:$0xff] }
  0x16   :  { %vm371_vm8 = vcmp.lt.s32.totalorder %v355_v19, 16  ;;  %v205_v33 = vmul.f32 %v1073_v28, %v148_v26  ;;  %v1476_v42 = vadd.s32 56, %v1334_v6  ;;  %v70_v44 = vand.u32 15, %v1468_v31  ;;  %554 = vmatpush.bf16.msrb.mxu0 %v1270_v9  ;;  %v1285_v31 = vld [vmem:[%s1742_s2 + $0x70] sm:$0xff] }
  0x17   :  { %v1105_v39 = vsel %vm371_vm8, 1.0, %v1296_v29  ;;  %v344_v47 = vsel %vm341_vm2, %v337_v51, %v338_v22  ;;  %v142_v52 = vrot.slane %v134_v16, 7  ;;  %v340_v54 = vrot.slane %v1358_v14, 1  ;;  %1289 = vmatpush.bf16.msra.mxu3 %v1270_v9 }
  0x18   :  { %v403_v45 = vmul.f32 %v1105_v39, %v343_v38  ;;  %v211_v46 = vpack.c.bf16 %v147_v40, %v205_v33  ;;  %v77_v48 = vand.u32 15, %v1476_v42  ;;  %v159_v49 = vadd.s32 4294967295, %v70_v44 }
  0x19   :  { %1088 = vmatmul.msk.bf16.gmra.mxu0 %vm238_vm0, %v218_v56  ;;  %v146_v51 = vsel %vm144_vm1, %v141_v25, %v142_v52  ;;  %v220_v57 = vpack.c.bf16 %v1358_v14, %v134_v16  ;;  %v349_v59 = vsel %vm341_vm2, %v340_v54, %v333_v27  ;;  %v145_v63 = vsel %vm144_vm1, %v142_v52, %v143_v21  ;;  %v1269_v14 = vld [vmem:[%s1742_s2 + $0x20] sm:$0xff]  ;;  %v1268_v21 = vld [vmem:[%s1742_s2 + $0x18] sm:$0xff]  ;;  %v1267_v27 = vld [vmem:[%s1742_s2 + $0x10] sm:$0xff] }
  0x1a   :  { %v408_v50 = vpack.c.bf16 %v403_v45, %v344_v47  ;;  %v357_v53 = vadd.s32 1, %v77_v48  ;;  %vm167_vm9 = vcmp.ge.s32.totalorder %v159_v49, 0  ;;  %v342_v7 = vsel %vm341_vm2, %v339_v24, %v340_v54  ;;  %555 = vmatpush.bf16.msrb.mxu0 %v1269_v14  ;;  %v1265_v16 = vld [vmem:[%s1742_s2] sm:$0xff] }
  0x1b   :  { %v1074_v56 = vsel %vm167_vm9, 1.0, %v1296_v29  ;;  %1290 = vmatpush.bf16.msra.mxu3 %v1269_v14  ;;  %vm802_vm12 = vcmp.lt.s32.totalorder %v1334_v6, 6  ;;  %vm605_vm1 = vcmp.lt.s32.totalorder %v1334_v6, 2  ;;  %v620_v55 = vadd.s32 4294967294, %v70_v44  ;;  %v1283_v6 = vld [vmem:[%s1742_s2 + $0x60] sm:$0xff]  ;;  %v1282_v44 = vld [vmem:[%s1742_s2 + $0x58] sm:$0xff] }
  0x1c   :  { %vm373_vm10 = vcmp.lt.s32.totalorder %v357_v53, 16  ;;  %v207_v58 = vmul.f32 %v1074_v56, %v146_v51 }
  0x1d   :  { %v1106_v60 = vsel %vm373_vm10, 1.0, %v1296_v29  ;;  %vm628_vm5 = vcmp.ge.s32.totalorder %v620_v55, 0 }
  0x1e   :  { %1100 = vmatmul.msk.bf16.gmra.mxu1 %vm238_vm0, %v210_v0  ;;  %v405_v0 = vmul.f32 %v1106_v60, %v349_v59  ;;  %v212_v1 = vpack.c.bf16 %v145_v63, %v207_v58  ;;  %556 = vmatpush.bf16.msrb.mxu0 %v1268_v21 }
  0x1f   :  { %1291 = vmatpush.bf16.msra.mxu3 %v1268_v21 }
  0x20   :  { %1120 = vmatmul.msk.bf16.gmra.mxu2 %vm238_vm0, %v407_v11  ;;  %v409_v11 = vpack.c.bf16 %v405_v0, %v342_v7 }
  0x22   :  { %557 = vmatpush.bf16.msrb.mxu0 %v1267_v27 }
  0x23   :  { %1292 = vmatpush.bf16.msra.mxu3 %v1267_v27 }
  0x26   :  { %558 = vmatpush.bf16.msrb.mxu0 %v1266_v12 }
  0x27   :  { %1293 = vmatpush.bf16.msra.mxu3 %v1266_v12 }
  0x29   :  { %1089 = vmatmul.msk.bf16.gmra.mxu0 %vm238_vm0, %v219_v32 }
  0x2a   :  { %559 = vmatpush.bf16.msrb.mxu0 %v1265_v16 }
  0x2b   :  { %1294 = vmatpush.bf16.msra.mxu3 %v1265_v16 }
  0x2e   :  { %1101 = vmatmul.msk.bf16.gmra.mxu1 %vm238_vm0, %v211_v46 }
  0x30   :  { %1121 = vmatmul.msk.bf16.gmra.mxu2 %vm238_vm0, %v408_v50 }
  0x39   :  { %1090 = vmatmul.msk.bf16.gmra.mxu0 %vm238_vm0, %v220_v57 }
  0x3e   :  { %1102 = vmatmul.msk.bf16.gmra.mxu1 %vm238_vm0, %v212_v1 }
  0x40   :  { %1122 = vmatmul.msk.bf16.gmra.mxu2 %vm238_vm0, %v409_v11 }
  0x86   :  { %v260_v18 = vpop.f32.mrf.mxu0 }
  0x8b   :  { %v313_v19 = vpop.f32.mrf.mxu1 }
  0x8c   :  { %v314_v25 = vadd.f32 %v313_v19, %v260_v18 }
  0x8e   :  { %v262_v20 = vpop.f32.mrf.mxu0 }
  0x93   :  { %v315_v22 = vpop.f32.mrf.mxu1  ;;  %v448_v24 = vpop.f32.mrf.mxu2 }
  0x94   :  { %v316_v28 = vadd.f32 %v315_v22, %v262_v20  ;;  %v468_v30 = vadd.f32 %v448_v24, %v314_v25 }
  0x96   :  { %v265_v26 = vpop.f32.mrf.mxu0  ;;  %v476_v39 = vmax.f32 %v468_v30, 0.0 }
  0x9b   :  { %v318_v32 = vpop.f32.mrf.mxu1  ;;  %v450_v33 = vpop.f32.mrf.mxu2 }
  0x9c   :  { %v469_v38 = vadd.f32 %v450_v33, %v316_v28  ;;  %v319_v50 = vadd.f32 %v318_v32, %v265_v26 }
  0x9e   :  { %v477_v40 = vmax.f32 %v469_v38, 0.0  ;;  %v267_v46 = vpop.f32.mrf.mxu0 }
  0xa0   :  { %v484_v45 = vpack.c.bf16 %v477_v40, %v476_v39  ;;  %v1278_v40 = vld [vmem:[%s1740_s1 + $0x58] sm:$0xff] }
  0xa1   :  { %906 = vmatpush.bf16.msrb.mxu2 %v1278_v40 }
  0xa2   :  { %560 = vmatmul.bf16.vlgmr.msrb.gmra.mxu0 %v484_v45  ;;  %v1276_v45 = vld [vmem:[%s1740_s1 + $0x48] sm:$0xff] }
  0xa3   :  { %v320_v47 = vpop.f32.mrf.mxu1  ;;  %v453_v49 = vpop.f32.mrf.mxu2  ;;  %718 = vmatpush.bf16.msra.mxu0 %v1276_v45 }
  0xa4   :  { %v321_v52 = vadd.f32 %v320_v47, %v267_v46  ;;  %v470_v53 = vadd.f32 %v453_v49, %v319_v50  ;;  %v1275_v46 = vld [vmem:[%s1740_s1 + $0x40] sm:$0xff]  ;;  %v1274_v47 = vld [vmem:[%s1740_s1 + $0x38] sm:$0xff]  ;;  %v1277_v49 = vld [vmem:[%s1740_s1 + $0x50] sm:$0xff] }
  0xa5   :  { %771 = vmatpush.bf16.msrb.mxu1 %v1274_v47  ;;  %907 = vmatpush.bf16.msrb.mxu2 %v1277_v49 }
  0xa6   :  { %v270_v51 = vpop.f32.mrf.mxu0  ;;  %v478_v58 = vmax.f32 %v470_v53, 0.0 }
  0xa7   :  { %719 = vmatpush.bf16.msra.mxu0 %v1275_v46  ;;  %v614_v46 = vadd.s32 4294967294, %v28_v13  ;;  %v818_v13 = vadd.s32 2, %v77_v48 }
  0xa9   :  { %vm622_vm15 = vcmp.ge.s32.totalorder %v614_v46, 0  ;;  %vm834_vm2 = vcmp.lt.s32.totalorder %v818_v13, 16 }
  0xab   :  { %v323_v54 = vpop.f32.mrf.mxu1  ;;  %v455_v56 = vpop.f32.mrf.mxu2 }
  0xac   :  { %v471_v57 = vadd.f32 %v455_v56, %v321_v52  ;;  %v324_v7 = vadd.f32 %v323_v54, %v270_v51 }
  0xae   :  { %v479_v59 = vmax.f32 %v471_v57, 0.0  ;;  %v272_v1 = vpop.f32.mrf.mxu0  ;;  %v1273_v57 = vld [vmem:[%s1740_s1 + $0x30] sm:$0xff] }
  0xaf   :  { %772 = vmatpush.bf16.msrb.mxu1 %v1273_v57 }
  0xb0   :  { %v485_v60 = vpack.c.bf16 %v479_v59, %v478_v58 }
  0xb2   :  { %565 = vmatmul.bf16.vlgmr.msra.gmra.mxu3 %v485_v60 }
  0xb3   :  { %v325_v63 = vpop.f32.mrf.mxu1  ;;  %v458_v0 = vpop.f32.mrf.mxu2 }
  0xb4   :  { %v326_v11 = vadd.f32 %v325_v63, %v272_v1  ;;  %v472_v9 = vadd.f32 %v458_v0, %v324_v7 }
  0xb6   :  { %v480_v12 = vmax.f32 %v472_v9, 0.0  ;;  %v275_v18 = vpop.f32.mrf.mxu0 }
  0xbb   :  { %v460_v14 = vpop.f32.mrf.mxu2  ;;  %v328_v27 = vpop.f32.mrf.mxu1 }
  0xbc   :  { %v473_v21 = vadd.f32 %v460_v14, %v326_v11  ;;  %v329_v22 = vadd.f32 %v328_v27, %v275_v18 }
  0xbe   :  { %v481_v16 = vmax.f32 %v473_v21, 0.0  ;;  %v277_v25 = vpop.f32.mrf.mxu0 }
  0xc0   :  { %v486_v19 = vpack.c.bf16 %v481_v16, %v480_v12  ;;  %v814_v12 = vadd.s32 2, %v49_v43 }
  0xc2   :  { %570 = vmatmul.bf16.gmra.mxu3 %v486_v19  ;;  %vm830_vm13 = vcmp.lt.s32.totalorder %v814_v12, 16 }
  0xc3   :  { %v463_v20 = vpop.f32.mrf.mxu2  ;;  %v330_v24 = vpop.f32.mrf.mxu1 }
  0xc4   :  { %v331_v26 = vadd.f32 %v330_v24, %v277_v25  ;;  %v474_v28 = vadd.f32 %v463_v20, %v329_v22  ;;  %v1192_v22 = vsel %vm830_vm13, 1.0, %v1296_v29 }
  0xc6   :  { %v482_v33 = vmax.f32 %v474_v28, 0.0 }
  0xcb   :  { %v465_v30 = vpop.f32.mrf.mxu2 }
  0xcc   :  { %v475_v32 = vadd.f32 %v465_v30, %v331_v26 }
  0xce   :  { %v483_v38 = vmax.f32 %v475_v32, 0.0  ;;  %v816_v32 = vadd.s32 2, %v63_v3 }
  0xd0   :  { %v487_v39 = vpack.c.bf16 %v483_v38, %v482_v33  ;;  %vm832_vm14 = vcmp.lt.s32.totalorder %v816_v32, 16  ;;  %v1286_v32 = vld [vmem:[%s1742_s2 + $0x78] sm:$0xff] }
  0xd1   :  { %v1193_v45 = vsel %vm832_vm14, 1.0, %v1296_v29  ;;  %1014 = vmatpush.bf16.msrb.mxu3 %v1286_v32 }
  0xd2   :  { %575 = vmatmul.bf16.gmra.mxu3 %v487_v39 }
  0xd5   :  { %1015 = vmatpush.bf16.msrb.mxu3 %v1285_v31 }
 0x11f   :  { %v561_v50 = vpop.f32.mrf.mxu0 }
 0x120   :  { %v1542_v52 = vadd.f32 %v561_v50, %v1332_v5  ;;  %v812_v5 = vadd.s32 2, %v35_v23 }
 0x122   :  { %v1548_v51 = vmax.f32 %v1542_v52, 0.0  ;;  %vm828_vm11 = vcmp.lt.s32.totalorder %v812_v5, 16 }
 0x123   :  { %v1191_v1 = vsel %vm828_vm11, 1.0, %v1296_v29 }
 0x124   :  { %v794_v7 = vrot.slane %v1548_v51, 2  ;;  %v597_v57 = vrot.slane %v1548_v51, 6 }
 0x127   :  { %v563_v53 = vpop.f32.mrf.mxu0 }
 0x128   :  { %v1545_v54 = vadd.f32 %v563_v53, %v1342_v8 }
 0x12a   :  { %v1551_v56 = vmax.f32 %v1545_v54, 0.0 }
 0x12c   :  { %v679_v58 = vpack.c.bf16 %v1551_v56, %v1548_v51  ;;  %v795_v63 = vrot.slane %v1551_v56, 2 }
 0x12e   :  { %1175 = vmatmul.msk.bf16.vlgmr.msra.gmra.mxu0 %vm238_vm0, %v679_v58  ;;  %v809_v9 = vsel %vm802_vm12, %v794_v7, %v795_v63  ;;  %v598_v58 = vrot.slane %v1551_v56, 6 }
 0x130   :  { %v612_v42 = vsel %vm605_vm1, %v597_v57, %v598_v58 }
 0x135   :  { %v566_v8 = vpop.f32.mrf.mxu3 }
 0x136   :  { %v1562_v59 = vadd.f32 %v566_v8, %v1363_v15 }
 0x138   :  { %v1565_v60 = vmax.f32 %v1562_v59, 0.0 }
 0x13a   :  { %v796_v0 = vrot.slane %v1565_v60, 2 }
 0x13c   :  { %v808_v17 = vsel %vm802_vm12, %v795_v63, %v796_v0 }
 0x13d   :  { %v568_v23 = vpop.f32.mrf.mxu3  ;;  %v860_v15 = vmul.f32 %v1191_v1, %v808_v17  ;;  %v1194_v1 = vsel %vm834_vm2, 1.0, %v1296_v29 }
 0x13e   :  { %v1575_v11 = vadd.f32 %v568_v23, %v1396_v35  ;;  %v616_v23 = vadd.s32 4294967294, %v42_v41 }
 0x13f   :  { %v867_v14 = vpack.c.bf16 %v860_v15, %v809_v9  ;;  %v599_v15 = vrot.slane %v1565_v60, 6 }
 0x140   :  { %v1580_v21 = vmax.f32 %v1575_v11, 0.0  ;;  %vm624_vm3 = vcmp.ge.s32.totalorder %v616_v23, 0 }
 0x141   :  { %1207 = vmatmul.msk.bf16.vlgmr.msrb.gmra.mxu2 %vm238_vm0, %v867_v14  ;;  %v1156_v12 = vsel %vm624_vm3, 1.0, %v1296_v29 }
 0x142   :  { %v680_v27 = vpack.c.bf16 %v1580_v21, %v1565_v60  ;;  %v797_v19 = vrot.slane %v1580_v21, 2  ;;  %v618_v60 = vadd.s32 4294967294, %v56_v62 }
 0x144   :  { %1176 = vmatmul.msk.bf16.gmra.mxu0 %vm238_vm0, %v680_v27  ;;  %v600_v27 = vrot.slane %v1580_v21, 6  ;;  %vm626_vm4 = vcmp.ge.s32.totalorder %v618_v60, 0 }
 0x145   :  { %v571_v16 = vpop.f32.mrf.mxu3 }
 0x146   :  { %v1589_v35 = vadd.f32 %v571_v16, %v1404_v37  ;;  %v807_v37 = vsel %vm802_vm12, %v796_v0, %v797_v19  ;;  %v610_v34 = vsel %vm605_vm1, %v599_v15, %v600_v27 }
 0x148   :  { %v1592_v18 = vmax.f32 %v1589_v35, 0.0 }
 0x14a   :  { %v798_v20 = vrot.slane %v1592_v18, 2 }
 0x14c   :  { %v806_v36 = vsel %vm802_vm12, %v797_v19, %v798_v20  ;;  %v601_v19 = vrot.slane %v1592_v18, 6 }
 0x14d   :  { %v573_v43 = vpop.f32.mrf.mxu3  ;;  %v862_v24 = vmul.f32 %v1192_v22, %v806_v36  ;;  %v1157_v22 = vsel %vm626_vm4, 1.0, %v1296_v29 }
 0x14e   :  { %v1600_v25 = vadd.f32 %v573_v43, %v1442_v2 }
 0x14f   :  { %v868_v26 = vpack.c.bf16 %v862_v24, %v807_v37  ;;  %v1158_v37 = vsel %vm628_vm5, 1.0, %v1296_v29 }
 0x150   :  { %v1605_v28 = vmax.f32 %v1600_v25, 0.0 }
 0x151   :  { %1208 = vmatmul.msk.bf16.gmra.mxu2 %vm238_vm0, %v868_v26 }
 0x152   :  { %v681_v30 = vpack.c.bf16 %v1605_v28, %v1592_v18  ;;  %v799_v39 = vrot.slane %v1605_v28, 2  ;;  %v602_v21 = vrot.slane %v1605_v28, 6 }
 0x154   :  { %1177 = vmatmul.msk.bf16.gmra.mxu0 %vm238_vm0, %v681_v30  ;;  %v608_v36 = vsel %vm605_vm1, %v601_v19, %v602_v21 }
 0x155   :  { %v576_v33 = vpop.f32.mrf.mxu3 }
 0x156   :  { %v1614_v2 = vadd.f32 %v576_v33, %v1448_v4  ;;  %v805_v4 = vsel %vm802_vm12, %v798_v20, %v799_v39  ;;  %v609_v20 = vsel %vm605_vm1, %v600_v27, %v601_v19  ;;  %v1281_v33 = vld [vmem:[%s1742_s2 + $0x50] sm:$0xff] }
 0x157   :  { %v666_v43 = vmul.f32 %v1157_v22, %v609_v20 }
 0x158   :  { %v595_v38 = vmax.f32 %v1614_v2, 0.0 }
 0x159   :  { %v672_v24 = vpack.c.bf16 %v608_v36, %v666_v43 }
 0x15a   :  { %v800_v40 = vrot.slane %v595_v38, 2  ;;  %v603_v62 = vrot.slane %v595_v38, 6 }
 0x15c   :  { %v804_v61 = vsel %vm802_vm12, %v799_v39, %v800_v40  ;;  %v607_v18 = vsel %vm605_vm1, %v602_v21, %v603_v62  ;;  %v1279_v39 = vld [vmem:[%s1742_s2 + $0x40] sm:$0xff] }
 0x15d   :  { %v578_v3 = vpop.f32.mrf.mxu3  ;;  %v864_v47 = vmul.f32 %v1193_v45, %v804_v61  ;;  %v668_v28 = vmul.f32 %v1158_v37, %v607_v18 }
 0x15e   :  { %v1624_v49 = vadd.f32 %v578_v3, %v1350_v10  ;;  %v1155_v10 = vsel %vm622_vm15, 1.0, %v1296_v29  ;;  %v1284_v29 = vld [vmem:[%s1742_s2 + $0x68] sm:$0xff] }
 0x15f   :  { %v869_v50 = vpack.c.bf16 %v864_v47, %v805_v4  ;;  %1016 = vmatpush.bf16.msrb.mxu3 %v1284_v29 }
 0x160   :  { %v596_v53 = vmax.f32 %v1624_v49, 0.0 }
 0x161   :  { %1209 = vmatmul.msk.bf16.gmra.mxu2 %vm238_vm0, %v869_v50 }
 0x162   :  { %v604_v5 = vrot.slane %v596_v53, 6  ;;  %v682_v8 = vpack.c.bf16 %v596_v53, %v595_v38  ;;  %v801_v63 = vrot.slane %v596_v53, 2  ;;  %v1280_v38 = vld [vmem:[%s1742_s2 + $0x48] sm:$0xff] }
 0x163   :  { %1017 = vmatpush.bf16.msrb.mxu3 %v1283_v6 }
 0x164   :  { %1178 = vmatmul.msk.bf16.gmra.mxu0 %vm238_vm0, %v682_v8  ;;  %v613_v0 = vsel %vm605_vm1, %v604_v5, %v597_v57  ;;  %v810_v56 = vsel %vm802_vm12, %v801_v63, %v794_v7  ;;  %v803_v9 = vsel %vm802_vm12, %v800_v40, %v801_v63  ;;  %v611_v7 = vsel %vm605_vm1, %v598_v58, %v599_v15 }
 0x165   :  { %v662_v51 = vmul.f32 %v1155_v10, %v613_v0  ;;  %v866_v17 = vmul.f32 %v1194_v1, %v810_v56  ;;  %v664_v41 = vmul.f32 %v1156_v12, %v611_v7  ;;  %v606_v26 = vsel %vm605_vm1, %v603_v62, %v604_v5 }
 0x166   :  { %v673_v30 = vpack.c.bf16 %v606_v26, %v668_v28 }
 0x167   :  { %v670_v48 = vpack.c.bf16 %v612_v42, %v662_v51  ;;  %v870_v14 = vpack.c.bf16 %v866_v17, %v803_v9  ;;  %v671_v16 = vpack.c.bf16 %v610_v34, %v664_v41  ;;  %1018 = vmatpush.bf16.msrb.mxu3 %v1282_v44 }
 0x169   :  { %1187 = vmatmul.msk.bf16.vlgmr.msrb.gmra.mxu1 %vm238_vm0, %v670_v48 }
 0x16b   :  { %1019 = vmatpush.bf16.msrb.mxu3 %v1281_v33 }
 0x16f   :  { %1020 = vmatpush.bf16.msrb.mxu3 %v1280_v38 }
 0x171   :  { %1210 = vmatmul.msk.bf16.gmra.mxu2 %vm238_vm0, %v870_v14 }
 0x173   :  { %1021 = vmatpush.bf16.msrb.mxu3 %v1279_v39 }
 0x179   :  { %1188 = vmatmul.msk.bf16.gmra.mxu1 %vm238_vm0, %v671_v16 }
 0x189   :  { %1189 = vmatmul.msk.bf16.gmra.mxu1 %vm238_vm0, %v672_v24 }
 0x199   :  { %1190 = vmatmul.msk.bf16.gmra.mxu1 %vm238_vm0, %v673_v30 }
 0x1ab   :  { %v721_v40 = vpop.f32.mrf.mxu0 }
 0x1b3   :  { %v723_v46 = vpop.f32.mrf.mxu0 }
 0x1c1   :  { %v726_v4 = vpop.f32.mrf.mxu0 }
 0x1c4   :  { %v909_v45 = vpop.f32.mrf.mxu2 }
 0x1c9   :  { %v728_v63 = vpop.f32.mrf.mxu0 }
 0x1cc   :  { %v911_v61 = vpop.f32.mrf.mxu2 }
 0x1d1   :  { %v731_v17 = vpop.f32.mrf.mxu0 }
 0x1d4   :  { %v914_v50 = vpop.f32.mrf.mxu2 }
 0x1d9   :  { %v733_v12 = vpop.f32.mrf.mxu0 }
 0x1dc   :  { %v916_v51 = vpop.f32.mrf.mxu2 }
 0x1e1   :  { %v736_v36 = vpop.f32.mrf.mxu0 }
 0x1e4   :  { %v919_v15 = vpop.f32.mrf.mxu2 }
 0x1e6   :  { %v774_v3 = vpop.f32.mrf.mxu1 }
 0x1e7   :  { %v775_v47 = vadd.f32 %v774_v3, %v721_v40 }
 0x1e9   :  { %v929_v57 = vadd.f32 %v909_v45, %v775_v47  ;;  %v738_v18 = vpop.f32.mrf.mxu0 }
 0x1eb   :  { %v937_v5 = vmax.f32 %v929_v57, 0.0 }
 0x1ec   :  { %v921_v41 = vpop.f32.mrf.mxu2 }
 0x1ee   :  { %v776_v53 = vpop.f32.mrf.mxu1 }
 0x1ef   :  { %v777_v13 = vadd.f32 %v776_v53, %v723_v46 }
 0x1f1   :  { %v930_v58 = vadd.f32 %v911_v61, %v777_v13 }
 0x1f3   :  { %v938_v8 = vmax.f32 %v930_v58, 0.0 }
 0x1f4   :  { %v924_v24 = vpop.f32.mrf.mxu2 }
 0x1f5   :  { %v945_v10 = vpack.c.bf16 %v938_v8, %v937_v5 }
 0x1f6   :  { %v779_v0 = vpop.f32.mrf.mxu1 }
 0x1f7   :  { %1022 = vmatmul.bf16.vlgmr.msrb.gmra.mxu3 %v945_v10  ;;  %v780_v42 = vadd.f32 %v779_v0, %v726_v4 }
 0x1f9   :  { %v931_v56 = vadd.f32 %v914_v50, %v780_v42 }
 0x1fb   :  { %v939_v9 = vmax.f32 %v931_v56, 0.0 }
 0x1fc   :  { %v926_v30 = vpop.f32.mrf.mxu2 }
 0x1fe   :  { %v781_v48 = vpop.f32.mrf.mxu1 }
 0x1ff   :  { %v782_v1 = vadd.f32 %v781_v48, %v728_v63 }
 0x201   :  { %v932_v23 = vadd.f32 %v916_v51, %v782_v1 }
 0x203   :  { %v940_v14 = vmax.f32 %v932_v23, 0.0 }
 0x205   :  { %v946_v27 = vpack.c.bf16 %v940_v14, %v939_v9 }
 0x206   :  { %v784_v7 = vpop.f32.mrf.mxu1 }
 0x207   :  { %1027 = vmatmul.bf16.gmra.mxu3 %v946_v27  ;;  %v785_v34 = vadd.f32 %v784_v7, %v731_v17 }
 0x209   :  { %v933_v60 = vadd.f32 %v919_v15, %v785_v34 }
 0x20b   :  { %v941_v20 = vmax.f32 %v933_v60, 0.0 }
 0x20e   :  { %v786_v16 = vpop.f32.mrf.mxu1 }
 0x20f   :  { %v787_v19 = vadd.f32 %v786_v16, %v733_v12 }
 0x211   :  { %v934_v21 = vadd.f32 %v921_v41, %v787_v19 }
 0x213   :  { %v942_v22 = vmax.f32 %v934_v21, 0.0 }
 0x215   :  { %v947_v43 = vpack.c.bf16 %v942_v22, %v941_v20 }
 0x216   :  { %v789_v55 = vpop.f32.mrf.mxu1 }
 0x217   :  { %1032 = vmatmul.bf16.gmra.mxu3 %v947_v43  ;;  %v790_v62 = vadd.f32 %v789_v55, %v736_v36 }
 0x219   :  { %v935_v26 = vadd.f32 %v924_v24, %v790_v62 }
 0x21b   :  { %v943_v31 = vmax.f32 %v935_v26, 0.0 }
 0x21e   :  { %v791_v37 = vpop.f32.mrf.mxu1 }
 0x21f   :  { %v792_v28 = vadd.f32 %v791_v37, %v738_v18 }
 0x221   :  { %v936_v32 = vadd.f32 %v926_v30, %v792_v28 }
 0x223   :  { %v944_v29 = vmax.f32 %v936_v32, 0.0 }
 0x225   :  { %v948_v6 = vpack.c.bf16 %v944_v29, %v943_v31 }
 0x227   :  { %1037 = vmatmul.bf16.gmra.mxu3 %v948_v6 }
 0x27a   :  { %v1023_v44 = vpop.f32.mrf.mxu3 }
 0x27b   :  { %v1043_v33 = vadd.f32 %v1023_v44, %v1542_v52 }
 0x27d   :  { %v1051_v38 = vmax.f32 %v1043_v33, 0.0 }
 0x27f   :  { %1059 = vst.msk [vmem:[%s1743_s3] sm:$0xff] %vm238_vm0, %v1051_v38 }
 0x282   :  { %v1025_v39 = vpop.f32.mrf.mxu3 }
 0x283   :  { %v1044_v40 = vadd.f32 %v1025_v39, %v1545_v54 }
 0x285   :  { %v1052_v45 = vmax.f32 %v1044_v40, 0.0 }
 0x287   :  { %1060 = vst.msk [vmem:[%s1743_s3 + $0x8] sm:$0xff] %vm238_vm0, %v1052_v45 }
 0x28a   :  { %v1028_v46 = vpop.f32.mrf.mxu3 }
 0x28b   :  { %v1045_v61 = vadd.f32 %v1028_v46, %v1562_v59 }
 0x28d   :  { %v1053_v3 = vmax.f32 %v1045_v61, 0.0 }
 0x28f   :  { %1061 = vst.msk [vmem:[%s1743_s3 + $0x10] sm:$0xff] %vm238_vm0, %v1053_v3 }
 0x292   :  { %v1030_v52 = vpop.f32.mrf.mxu3 }
 0x293   :  { %v1046_v47 = vadd.f32 %v1030_v52, %v1575_v11 }
 0x295   :  { %v1054_v4 = vmax.f32 %v1046_v47, 0.0 }
 0x297   :  { %1062 = vst.msk [vmem:[%s1743_s3 + $0x18] sm:$0xff] %vm238_vm0, %v1054_v4 }
 0x29a   :  { %v1033_v54 = vpop.f32.mrf.mxu3 }
 0x29b   :  { %v1047_v50 = vadd.f32 %v1033_v54, %v1589_v35 }
 0x29d   :  { %v1055_v53 = vmax.f32 %v1047_v50, 0.0 }
 0x29f   :  { %1063 = vst.msk [vmem:[%s1743_s3 + $0x20] sm:$0xff] %vm238_vm0, %v1055_v53 }
 0x2a2   :  { %v1035_v59 = vpop.f32.mrf.mxu3 }
 0x2a3   :  { %v1048_v57 = vadd.f32 %v1035_v59, %v1600_v25 }
 0x2a5   :  { %v1056_v13 = vmax.f32 %v1048_v57, 0.0 }
 0x2a7   :  { %1064 = vst.msk [vmem:[%s1743_s3 + $0x28] sm:$0xff] %vm238_vm0, %v1056_v13 }
 0x2aa   :  { %v1038_v11 = vpop.f32.mrf.mxu3 }
 0x2ab   :  { %v1049_v58 = vadd.f32 %v1038_v11, %v1614_v2 }
 0x2ad   :  { %v1057_v5 = vmax.f32 %v1049_v58, 0.0 }
 0x2af   :  { %1065 = vst.msk [vmem:[%s1743_s3 + $0x30] sm:$0xff] %vm238_vm0, %v1057_v5 }
 0x2b2   :  { %v1040_v35 = vpop.f32.mrf.mxu3 }
 0x2b3   :  { %v1050_v8 = vadd.f32 %v1040_v35, %v1624_v49 }
 0x2b5   :  { %v1058_v10 = vmax.f32 %v1050_v8, 0.0 }
 0x2b7   :  { %1066 = vst.msk [vmem:[%s1743_s3 + $0x38] sm:$0xff] %vm238_vm0, %v1058_v10 }

</bundles_post_ra>
